<compile_context>
chip_gen: v7x
topology: tpu7x:2x2x1
jax: 0.10.0
libtpu: 0.0.40
codegen_flags: <defaults>
</compile_context>

<pallas_src>
from functools import partial

import jax
import jax.numpy as jnp
import numpy as np
from jax import lax
from jax.experimental import pallas as pl
from jax.experimental.pallas import tpu as pltpu


def _poly_conv_kernel(x_ref, m_ref, w_ref, o_ref, *, W, NT, drmin):
    # x_ref: (Cin, N)                original image(s); (batch, h, w) in lanes
    # m_ref: (NT*NT, N)              precomputed 0/1 zero-padding masks per tap
    # w_ref: (4*Cout, NT*NT*Cin + 1) phase-combined im2col weights + bias column
    # o_ref: (4*Cout, N)             phase-stacked output, lane-dense
    x = x_ref[...]
    N = x.shape[1]

    # Build the im2col in registers: one (Cin, N) slab per (dr, dc) tap.
    # Each slab is a static lane-roll of the flat image times a constant mask
    # (zero padding; also kills any roll wrap-around across batch boundaries).
    slabs = []
    for r in range(NT):
        dr = drmin + r
        for s in range(NT):
            dc = drmin + s
            shift = dr * W + dc
            shifted = x if shift == 0 else pltpu.roll(x, (-shift) % N, axis=1)
            slabs.append(shifted * m_ref[r * NT + s:r * NT + s + 1, :])
    slabs.append(jnp.ones((1, N), x.dtype))            # bias row (ones)
    g = jnp.concatenate(slabs, axis=0)                 # (NT*NT*Cin + 1, N)

    # Single MXU matmul producing all four output phases at once.
    out = jnp.dot(w_ref[...], g, preferred_element_type=jnp.float32)
    o_ref[...] = out.astype(o_ref.dtype)


def _polyphase_weights(w_hwio, pad):
    """Fold nearest-x2 upsample + KxK 'same' conv into per-phase im2col weights."""
    K, _, Cin, Cout = w_hwio.shape
    # Output row y = 2i + a of the upsampled conv reads original row
    # i + (a + kh - pad)//2 for tap kh (zero outside [0, H)); same for columns.
    drmin = (0 + 0 - pad) // 2
    drmax = (1 + (K - 1) - pad) // 2
    NT = drmax - drmin + 1
    A = np.zeros((2, NT, K), np.float32)               # A[a, dr - drmin, kh]
    for a in range(2):
        for kh in range(K):
            A[a, (a + kh - pad) // 2 - drmin, kh] = 1.0
    A = jnp.asarray(A, dtype=w_hwio.dtype)
    # Weff[a, b, co, r, s, ci] = sum_{kh,kw} A[a,r,kh] * A[b,s,kw] * w[kh,kw,ci,co]
    w_eff = jnp.einsum('arh,bsw,hwio->aborsi', A, A, w_hwio)
    w_poly = w_eff.reshape(4 * Cout, NT * NT * Cin)
    return w_poly, drmin, NT


def _pad_masks(H, W, B, NT, drmin):
    """Host-precomputed 0/1 validity masks (zero padding) per tap, tiled over batch."""
    lane = np.arange(H * W)
    row, col = lane // W, lane % W
    masks = np.zeros((NT * NT, H * W), np.float32)
    for r in range(NT):
        dr = drmin + r
        for s in range(NT):
            dc = drmin + s
            valid = ((row + dr >= 0) & (row + dr < H) &
                     (col + dc >= 0) & (col + dc < W))
            masks[r * NT + s] = valid.astype(np.float32)
    return np.tile(masks, (1, B))                      # lanes ordered (batch, h, w)


def upsample_conv(x_nchw, w_hwio, bias):
    """UpsampleConv forward: nearest x2 upsample, then same-padded conv (stride 1)."""
    B, Cin, H, W = x_nchw.shape
    K = w_hwio.shape[0]
    Cout = w_hwio.shape[3]
    assert K % 2 == 1, "padding=(K-1)//2 only matches 'same' conv for odd K"
    pad = (K - 1) // 2
    N = B * H * W

    w_poly, drmin, NT = _polyphase_weights(w_hwio, pad)       # (4*Cout, NT*NT*Cin)
    b_col = jnp.tile(bias, 4).reshape(4 * Cout, 1)            # bias per (a,b,co) row
    w_aug = jnp.concatenate([w_poly, b_col], axis=1)          # (4*Cout, NT*NT*Cin+1)
    w_aug = w_aug.astype(jnp.float32)

    masks = jnp.asarray(_pad_masks(H, W, B, NT, drmin))       # (NT*NT, N), constant

    # (B, Cin, H, W) -> (Cin, B*H*W): lanes ordered (batch, h, w).
    x_flat = jnp.transpose(x_nchw, (1, 0, 2, 3)).reshape(Cin, N)

    kernel = partial(_poly_conv_kernel, W=W, NT=NT, drmin=drmin)

    out_k = pl.pallas_call(
        kernel,
        out_shape=jax.ShapeDtypeStruct((4 * Cout, N), x_nchw.dtype),
        grid=(1,),
        in_specs=[
            pl.BlockSpec((Cin, N), lambda i: (0, 0)),
            pl.BlockSpec((NT * NT, N), lambda i: (0, 0)),
            pl.BlockSpec((4 * Cout, NT * NT * Cin + 1), lambda i: (0, 0)),
        ],
        out_specs=pl.BlockSpec((4 * Cout, N), lambda i: (0, 0)),
        compiler_params=pltpu.CompilerParams(
            dimension_semantics=("arbitrary",)),
    )(x_flat, masks, w_aug)

    # Interleave the four phases: (a, b, Cout, B, H, W) -> (B, Cout, 2H, 2W).
    out = out_k.reshape(2, 2, Cout, B, H, W)
    out = jnp.transpose(out, (3, 2, 4, 0, 5, 1))       # (B, Cout, H, a, W, b)
    return out.reshape(B, Cout, 2 * H, 2 * W)


def _reference(x_nchw, w_hwio, bias):
    x = jnp.transpose(x_nchw, (0, 2, 3, 1))
    x = jnp.repeat(jnp.repeat(x, 2, axis=1), 2, axis=2)
    y = lax.conv_general_dilated(
        x, w_hwio, window_strides=(1, 1), padding="SAME",
        dimension_numbers=("NHWC", "HWIO", "NHWC"))
    y = y + bias[None, None, None, :]
    return jnp.transpose(y, (0, 3, 1, 2))


if __name__ == "__main__":
    # Module config: in_channels=4, out_channels=8, kernel_size=3
    B, Cin, H, W = 2, 4, 16, 16
    Cout, K = 8, 3

    key = jax.random.PRNGKey(0)
    kx, kw, kb = jax.random.split(key, 3)
    x = jax.random.normal(kx, (B, Cin, H, W), jnp.float32)
    # Conv2d weight is (Cout, Cin, K, K) in PyTorch; materialized here in HWIO.
    w = 0.1 * jax.random.normal(kw, (K, K, Cin, Cout), jnp.float32)
    b = 0.1 * jax.random.normal(kb, (Cout,), jnp.float32)

    out = upsample_conv(x, w, b)
    jax.block_until_ready(out)

    ref = _reference(x, w, b)
    assert out.shape == (B, Cout, 2 * H, 2 * W), out.shape
    assert jnp.allclose(out, ref, atol=1e-4, rtol=1e-4), "mismatch vs reference"

    print("KERNEL_OK")
</pallas_src>

<mosaic_0001>
module attributes {stable_mosaic.version = 11 : i64} {
  func.func @_poly_conv_kernel(%arg0: i32, %arg1: memref<4x512xf32, #tpu.memory_space<vmem>>, %arg2: memref<9x512xf32, #tpu.memory_space<vmem>>, %arg3: memref<32x37xf32, #tpu.memory_space<vmem>>, %arg4: memref<32x512xf32, #tpu.memory_space<vmem>>) attributes {dimension_semantics = [#tpu.dimension_semantics<arbitrary>], iteration_bounds = array<i64: 1>, scalar_prefetch = 0 : i64, scratch_operands = 0 : i64, tpu.core_type = #tpu.core_type<tc>, window_params = [{pipeline_mode = #tpu.pipeline_mode<synchronous>, transform_indices = @transform_0, window_bounds = array<i64: 4, 512>}, {pipeline_mode = #tpu.pipeline_mode<synchronous>, transform_indices = @transform_1, window_bounds = array<i64: 9, 512>}, {pipeline_mode = #tpu.pipeline_mode<synchronous>, transform_indices = @transform_2, window_bounds = array<i64: 32, 37>}, {pipeline_mode = #tpu.pipeline_mode<synchronous>, transform_indices = @transform_3, window_bounds = array<i64: 32, 512>}]} {
    %c0 = arith.constant 0 : index
    %c0_0 = arith.constant 0 : index
    %0 = vector.load %arg1[%c0, %c0_0] : memref<4x512xf32, #tpu.memory_space<vmem>>, vector<4x512xf32>
    %c17_i32 = arith.constant 17 : i32
    %1 = tpu.dynamic_rotate %0 by %c17_i32 dim 1 : vector<4x512xf32>, i32 -> vector<4x512xf32>
    %c0_1 = arith.constant 0 : index
    %c0_2 = arith.constant 0 : index
    %2 = vector.load %arg2[%c0_1, %c0_2] : memref<9x512xf32, #tpu.memory_space<vmem>>, vector<1x512xf32>
    %3 = vector.broadcast %2 : vector<1x512xf32> to vector<4x512xf32>
    %4 = arith.mulf %1, %3 : vector<4x512xf32>
    %c16_i32 = arith.constant 16 : i32
    %5 = tpu.dynamic_rotate %0 by %c16_i32 dim 1 : vector<4x512xf32>, i32 -> vector<4x512xf32>
    %c1 = arith.constant 1 : index
    %c0_3 = arith.constant 0 : index
    %6 = vector.load %arg2[%c1, %c0_3] : memref<9x512xf32, #tpu.memory_space<vmem>>, vector<1x512xf32>
    %7 = vector.broadcast %6 : vector<1x512xf32> to vector<4x512xf32>
    %8 = arith.mulf %5, %7 : vector<4x512xf32>
    %c15_i32 = arith.constant 15 : i32
    %9 = tpu.dynamic_rotate %0 by %c15_i32 dim 1 : vector<4x512xf32>, i32 -> vector<4x512xf32>
    %c2 = arith.constant 2 : index
    %c0_4 = arith.constant 0 : index
    %10 = vector.load %arg2[%c2, %c0_4] : memref<9x512xf32, #tpu.memory_space<vmem>>, vector<1x512xf32>
    %11 = vector.broadcast %10 : vector<1x512xf32> to vector<4x512xf32>
    %12 = arith.mulf %9, %11 : vector<4x512xf32>
    %c1_i32 = arith.constant 1 : i32
    %13 = tpu.dynamic_rotate %0 by %c1_i32 dim 1 : vector<4x512xf32>, i32 -> vector<4x512xf32>
    %c3 = arith.constant 3 : index
    %c0_5 = arith.constant 0 : index
    %14 = vector.load %arg2[%c3, %c0_5] : memref<9x512xf32, #tpu.memory_space<vmem>>, vector<1x512xf32>
    %15 = vector.broadcast %14 : vector<1x512xf32> to vector<4x512xf32>
    %16 = arith.mulf %13, %15 : vector<4x512xf32>
    %c4 = arith.constant 4 : index
    %c0_6 = arith.constant 0 : index
    %17 = vector.load %arg2[%c4, %c0_6] : memref<9x512xf32, #tpu.memory_space<vmem>>, vector<1x512xf32>
    %18 = vector.broadcast %17 : vector<1x512xf32> to vector<4x512xf32>
    %19 = arith.mulf %0, %18 : vector<4x512xf32>
    %c511_i32 = arith.constant 511 : i32
    %20 = tpu.dynamic_rotate %0 by %c511_i32 dim 1 : vector<4x512xf32>, i32 -> vector<4x512xf32>
    %c5 = arith.constant 5 : index
    %c0_7 = arith.constant 0 : index
    %21 = vector.load %arg2[%c5, %c0_7] : memref<9x512xf32, #tpu.memory_space<vmem>>, vector<1x512xf32>
    %22 = vector.broadcast %21 : vector<1x512xf32> to vector<4x512xf32>
    %23 = arith.mulf %20, %22 : vector<4x512xf32>
    %c497_i32 = arith.constant 497 : i32
    %24 = tpu.dynamic_rotate %0 by %c497_i32 dim 1 : vector<4x512xf32>, i32 -> vector<4x512xf32>
    %c6 = arith.constant 6 : index
    %c0_8 = arith.constant 0 : index
    %25 = vector.load %arg2[%c6, %c0_8] : memref<9x512xf32, #tpu.memory_space<vmem>>, vector<1x512xf32>
    %26 = vector.broadcast %25 : vector<1x512xf32> to vector<4x512xf32>
    %27 = arith.mulf %24, %26 : vector<4x512xf32>
    %c496_i32 = arith.constant 496 : i32
    %28 = tpu.dynamic_rotate %0 by %c496_i32 dim 1 : vector<4x512xf32>, i32 -> vector<4x512xf32>
    %c7 = arith.constant 7 : index
    %c0_9 = arith.constant 0 : index
    %29 = vector.load %arg2[%c7, %c0_9] : memref<9x512xf32, #tpu.memory_space<vmem>>, vector<1x512xf32>
    %30 = vector.broadcast %29 : vector<1x512xf32> to vector<4x512xf32>
    %31 = arith.mulf %28, %30 : vector<4x512xf32>
    %c495_i32 = arith.constant 495 : i32
    %32 = tpu.dynamic_rotate %0 by %c495_i32 dim 1 : vector<4x512xf32>, i32 -> vector<4x512xf32>
    %c8 = arith.constant 8 : index
    %c0_10 = arith.constant 0 : index
    %33 = vector.load %arg2[%c8, %c0_10] : memref<9x512xf32, #tpu.memory_space<vmem>>, vector<1x512xf32>
    %34 = vector.broadcast %33 : vector<1x512xf32> to vector<4x512xf32>
    %35 = arith.mulf %32, %34 : vector<4x512xf32>
    %cst = arith.constant 1.000000e+00 : f32
    %36 = vector.broadcast %cst : f32 to vector<1x512xf32>
    %37 = tpu.concatenate %4, %8, %12, %16, %19, %23, %27, %31, %35, %36 in 0 : vector<4x512xf32>, vector<4x512xf32>, vector<4x512xf32>, vector<4x512xf32>, vector<4x512xf32>, vector<4x512xf32>, vector<4x512xf32>, vector<4x512xf32>, vector<4x512xf32>, vector<1x512xf32> -> vector<37x512xf32>
    %c0_11 = arith.constant 0 : index
    %c0_12 = arith.constant 0 : index
    %38 = vector.load %arg3[%c0_11, %c0_12] : memref<32x37xf32, #tpu.memory_space<vmem>>, vector<32x37xf32>
    %cst_13 = arith.constant dense<0.000000e+00> : vector<32x512xf32>
    %39 = tpu.matmul %38, %37, %cst_13 {dimension_numbers = #tpu.dot_dimension_numbers<[1], [0], [0], [1], [0, 0, 1, 1], [], []>} : vector<32x37xf32>, vector<37x512xf32>, vector<32x512xf32> -> vector<32x512xf32>
    %c0_14 = arith.constant 0 : index
    %c0_15 = arith.constant 0 : index
    %40 = vector.load %arg4[%c0_14, %c0_15] : memref<32x512xf32, #tpu.memory_space<vmem>>, vector<32x512xf32>
    tpu.vector_store %arg4[%c0_14, %c0_15], %39 {strides = array<i32>} : memref<32x512xf32, #tpu.memory_space<vmem>>, vector<32x512xf32>,
    return
  }
  func.func @transform_0(%arg0: i32) -> (i32, i32) {
    %c0_i32 = arith.constant 0 : i32
    %c0_i32_0 = arith.constant 0 : i32
    %c0_i32_1 = arith.constant 0 : i32
    return %c0_i32, %c0_i32_0 : i32, i32
  }
  func.func @transform_1(%arg0: i32) -> (i32, i32) {
    %c0_i32 = arith.constant 0 : i32
    %c0_i32_0 = arith.constant 0 : i32
    %c0_i32_1 = arith.constant 0 : i32
    return %c0_i32, %c0_i32_0 : i32, i32
  }
  func.func @transform_2(%arg0: i32) -> (i32, i32) {
    %c0_i32 = arith.constant 0 : i32
    %c0_i32_0 = arith.constant 0 : i32
    %c0_i32_1 = arith.constant 0 : i32
    return %c0_i32, %c0_i32_0 : i32, i32
  }
  func.func @transform_3(%arg0: i32) -> (i32, i32) {
    %c0_i32 = arith.constant 0 : i32
    %c0_i32_0 = arith.constant 0 : i32
    %c0_i32_1 = arith.constant 0 : i32
    return %c0_i32, %c0_i32_0 : i32, i32
  }
}

</mosaic_0001>

<bundles_post_ra>
// kernel: tpu_custom_call.1
= control target key start
LH: loop header
LB: loop body
LE: loop exit
PB: predicated region body
PF: predicated region fallthrough
CT: control target
= control target key end

     0   :  { %8 = vsyncpa [#allocation3], 0  ;;  %s1142_s0 = inlined_call_operand.hbm [shape: f32[4,512], index: 0, kind: input, shape index: {}]   ;;  %s1143_s1 = inlined_call_operand.hbm [shape: f32[9,512], index: 1, kind: input, shape index: {}]   ;;  %s1144_s2 = inlined_call_operand.hbm [shape: f32[32,37], index: 2, kind: input, shape index: {}]   ;;  %s1145_s3 = inlined_call_operand.hbm [shape: f32[32,512], index: 3, kind: output, shape index: {}]  }
   0x1   :  { %9 = vsyncpa [#allocation6], 0 }
   0x2   :  { %10 = vsyncpa [#allocation4], 0  ;;  %s866_s12 = smov [#allocation5]   ;;  %s772_s16 = scalar_lea.hbm %s1143_s1, 1024 }
   0x3   :  { %s26_s13 = sshll.u32 %s866_s12, 4  ;;  %p773_p0 = scmp.ne.s32.totalorder %s1143_s1, %s772_s16  ;;  %s27_s13 = int_to_ptr.vmem [resolvable:$true] %s26_s13 }
   0x4   :  { %p776_p1 = scmp.lt.u32.totalorder %s772_s16, %s1143_s1 }
   0x6   :  { %p778_p2 = pnand %p776_p1, %p773_p0 }
   0x8   :  { %781 = shalt.err (!%p778_p2)
}
   0x9   :  { %s782_s21 = scalar_lea.vmem %s27_s13, 1024  ;;  %p787_p4 = scmp.lt.s32.totalorder %s27_s13, %s27_s13 }
   0xa   :  { %p783_p3 = scmp.ne.s32.totalorder %s27_s13, %s782_s21  ;;  %p788_p5 = scmp.lt.s32.totalorder %s782_s21, %s782_s21 }
   0xc   :  { %p789_p6 = por %p788_p5, %p787_p4 }
   0xe   :  { %p790_p7 = pnand %p789_p6, %p783_p3 }
  0x10   :  { %793 = shalt.err (!%p790_p7)
}
  0x11   :  { %s867_s22 = smov 512   ;;  %s868_s23 = smov 32  }
  0x12   :  { %32 = dma.hbm_to_vmem [thread:$0]  %s1143_s1, 1024, %s27_s13, [#allocation6], %s867_s22, %s867_s22, %s868_s23  }
  0x13   :  { %s869_s26 = smov [#allocation2]   ;;  %s870_s28 = smov [#allocation7]  }
  0x14   :  { %s17_s27 = sshll.u32 %s869_s26, 4  ;;  %s38_s29 = sshll.u32 %s870_s28, 4  ;;  %s18_s27 = int_to_ptr.vmem [resolvable:$true] %s17_s27  ;;  %s39_s29 = int_to_ptr.vmem [resolvable:$true] %s38_s29 }
  0x15   :  { %s794_s5 = scalar_lea.hbm %s1142_s0, 256 }
  0x16   :  { %p795_p8 = scmp.ne.s32.totalorder %s1142_s0, %s794_s5  ;;  %p798_p9 = scmp.lt.u32.totalorder %s794_s5, %s1142_s0 }
  0x18   :  { %p800_p10 = pnand %p798_p9, %p795_p8 }
  0x1a   :  { %803 = shalt.err (!%p800_p10)
}
  0x1b   :  { %s804_s1 = scalar_lea.vmem %s18_s27, 256  ;;  %p809_p12 = scmp.lt.s32.totalorder %s18_s27, %s18_s27 }
  0x1c   :  { %p805_p11 = scmp.ne.s32.totalorder %s18_s27, %s804_s1  ;;  %p810_p13 = scmp.lt.s32.totalorder %s804_s1, %s804_s1 }
  0x1e   :  { %p811_p0 = por %p810_p13, %p809_p12 }
  0x20   :  { %p812_p1 = pnand %p811_p0, %p805_p11 }
  0x22   :  { %815 = shalt.err (!%p812_p1)
}
  0x23   :  { %20 = dma.hbm_to_vmem [thread:$0]  %s1142_s0, 256, %s18_s27, [#allocation3]  }
  0x24   :  { %s816_s14 = scalar_lea.hbm %s1144_s2, 512 }
  0x25   :  { %p817_p2 = scmp.ne.s32.totalorder %s1144_s2, %s816_s14  ;;  %p820_p3 = scmp.lt.u32.totalorder %s816_s14, %s1144_s2 }
  0x27   :  { %p822_p4 = pnand %p820_p3, %p817_p2 }
  0x29   :  { %825 = shalt.err (!%p822_p4)
}
  0x2a   :  { %s826_s19 = scalar_lea.vmem %s39_s29, 512  ;;  %p831_p6 = scmp.lt.s32.totalorder %s39_s29, %s39_s29 }
  0x2b   :  { %p827_p5 = scmp.ne.s32.totalorder %s39_s29, %s826_s19  ;;  %p832_p7 = scmp.lt.s32.totalorder %s826_s19, %s826_s19 }
  0x2d   :  { %p833_p8 = por %p832_p7, %p831_p6 }
  0x2f   :  { %p834_p9 = pnand %p833_p8, %p827_p5 }
  0x31   :  { %837 = shalt.err (!%p834_p9)
}
  0x32   :  { %s871_s0 = smov 128   ;;  %s872_s20 = smov 8  }
  0x33   :  { %44 = dma.hbm_to_vmem [thread:$0]  %s1144_s2, 512, %s39_s29, [#allocation6], %s871_s0, %s871_s0, %s872_s20  }
  0x34   :  { %860 = dma.done.wait [#allocation3], 256  }
  0x35   :  { %861 = vsyncadd [#allocation3], 4294967040 }
  0x36   :  { %862 = dma.done.wait [#allocation6], 1536  }
  0x37   :  { %863 = vsyncadd [#allocation6], 4294965760  ;;  %v942_v0 = vld [vmem:[#allocation2 + $0x8] sm:$0xff]  ;;  %v944_v1 = vld [vmem:[#allocation2] sm:$0xff]  ;;  %s873_s25 = smov 16   ;;  %s874_s26 = smov 1   ;;  %v70_v7 = vlaneseq }
  0x38   :  { %107 = vrot.lane.b32.xlu1 %v942_v0, %s873_s25  ;;  %103 = vrot.lane.b32.xlu0 %v944_v1, %s873_s25  ;;  %v59_v2 = vcombine.high %v942_v0, %v942_v0  ;;  %v58_v3 = vcombine.high %v944_v1, %v944_v1  ;;  %s875_s2 = smov 17   ;;  %s876_s27 = smov 15   ;;  %v880_v4 = vmov 0.0   ;;  %v117_v16 = vld [vmem:[#allocation5 + $0x1] ss:$8 sm:$0xf] }
  0x39   :  { %s877_s28 = smov 127   ;;  %s878_s29 = smov 112   ;;  %577 = vmatprep.mubr.f32.mxu0 %v880_v4  ;;  %666 = vmatprep.mubr.f32.mxu1 %v880_v4  ;;  %v80_v10 = vshrl.u32 %v70_v7, 7  ;;  %v968_v13 = vand.u32 127, %v70_v7  ;;  %vm462_vm3 = vcmask 1043456   ;;  %vm500_vm9 = vcmask 1044480  }
  0x3a   :  { %s879_s30 = smov 113   ;;  %s881_s4 = smov 111   ;;  %v197_v21 = vld [vmem:[#allocation5 + $0x3] ss:$8 sm:$0xf]  ;;  %vm487_vm10 = vcmask 302080  }
  0x3b   :  { %v970_v14 = vsub.s32 0, %v80_v10  ;;  %v972_v15 = vsub.s32 3, %v80_v10  ;;  %v974_v17 = vsub.s32 1, %v80_v10  ;;  %v976_v18 = vsub.s32 2, %v80_v10  ;;  %s882_s5 = smov [#allocation8]  }
  0x3c   :  { %109 = vrot.lane.b32.xlu1 %v59_v2, %s873_s25  ;;  %183 = vrot.lane.b32.xlu0 %v944_v1, %s874_s26  ;;  %v77_v22 = vld [vmem:[#allocation5] ss:$8 sm:$0xf]  ;;  %vm111_vm0 = vcmp.lt.s32.totalorder %v968_v13, 16  ;;  %vm191_vm1 = vcmp.lt.s32.totalorder %v968_v13, 1  ;;  %vm72_vm2 = vcmp.lt.s32.totalorder %v968_v13, 17 }
  0x3d   :  { %v122_v23 = vrot.slane %v117_v16, %v970_v14  ;;  %v134_v24 = vrot.slane %v117_v16, %v972_v15  ;;  %v206_v25 = vrot.slane %v197_v21, %v974_v17  ;;  %v126_v26 = vrot.slane %v117_v16, %v974_v17  ;;  %v157_v34 = vld [vmem:[#allocation5 + $0x2] ss:$8 sm:$0xf]  ;;  %s712_s6 = sshll.u32 %s882_s5, 4  ;;  %s713_s6 = int_to_ptr.vmem [resolvable:$true] %s712_s6 }
  0x3e   :  { %v130_v27 = vrot.slane %v117_v16, %v976_v18  ;;  %v202_v28 = vrot.slane %v197_v21, %v970_v14  ;;  %v210_v31 = vrot.slane %v197_v21, %v976_v18  ;;  %v214_v32 = vrot.slane %v197_v21, %v972_v15  ;;  %s838_s7 = scalar_lea.vmem %s713_s6, 2048  ;;  %p843_p11 = scmp.lt.s32.totalorder %s713_s6, %s713_s6 }
  0x3f   :  { %v86_v33 = vrot.slane %v77_v22, %v974_v17  ;;  %v82_v37 = vrot.slane %v77_v22, %v970_v14  ;;  %v90_v40 = vrot.slane %v77_v22, %v976_v18  ;;  %v94_v41 = vrot.slane %v77_v22, %v972_v15  ;;  %p839_p10 = scmp.ne.s32.totalorder %s713_s6, %s838_s7  ;;  %p844_p12 = scmp.lt.s32.totalorder %s838_s7, %s838_s7 }
  0x40   :  { %185 = vrot.lane.b32.xlu1 %v58_v3, %s874_s26  ;;  %105 = vrot.lane.b32.xlu0 %v58_v3, %s873_s25  ;;  %vm151_vm4 = vcmp.lt.s32.totalorder %v968_v13, 15  ;;  %v166_v46 = vrot.slane %v157_v34, %v974_v17  ;;  %v162_v53 = vrot.slane %v157_v34, %v970_v14  ;;  %v170_v54 = vrot.slane %v157_v34, %v976_v18 }
  0x41   :  { %v174_v58 = vrot.slane %v157_v34, %v972_v15  ;;  %vm256_vm5 = vcmp.lt.s32.totalorder %v968_v13, 127  ;;  %vm336_vm6 = vcmp.lt.s32.totalorder %v968_v13, 112  ;;  %vm296_vm7 = vcmp.lt.s32.totalorder %v968_v13, 113  ;;  %p845_p13 = por %p844_p12, %p843_p11 }
  0x42   :  { %vm376_vm8 = vcmp.lt.s32.totalorder %v968_v13, 111  ;;  %v484_v13 = vld [vmem:[#allocation7 + $0x8] sm:$0xff] }
  0x43   :  { %p846_p0 = pnand %p845_p13, %p839_p10 }
  0x44   :  { %189 = vrot.lane.b32.xlu1 %v59_v2, %s874_s26  ;;  %187 = vrot.lane.b32.xlu0 %v942_v0, %s874_s26 }
  0x48   :  { %64 = vrot.lane.b32.xlu1 %v58_v3, %s875_s2  ;;  %62 = vrot.lane.b32.xlu0 %v944_v1, %s875_s2 }
  0x4c   :  { %68 = vrot.lane.b32.xlu1 %v59_v2, %s875_s2  ;;  %66 = vrot.lane.b32.xlu0 %v942_v0, %s875_s2 }
  0x50   :  { %145 = vrot.lane.b32.xlu1 %v58_v3, %s876_s27  ;;  %143 = vrot.lane.b32.xlu0 %v944_v1, %s876_s27 }
  0x54   :  { %149 = vrot.lane.b32.xlu1 %v59_v2, %s876_s27  ;;  %147 = vrot.lane.b32.xlu0 %v942_v0, %s876_s27 }
  0x58   :  { %250 = vrot.lane.b32.xlu1 %v58_v3, %s877_s28  ;;  %248 = vrot.lane.b32.xlu0 %v944_v1, %s877_s28 }
  0x5c   :  { %254 = vrot.lane.b32.xlu1 %v59_v2, %s877_s28  ;;  %252 = vrot.lane.b32.xlu0 %v942_v0, %s877_s28 }
  0x60   :  { %330 = vrot.lane.b32.xlu1 %v58_v3, %s878_s29  ;;  %328 = vrot.lane.b32.xlu0 %v944_v1, %s878_s29 }
  0x64   :  { %334 = vrot.lane.b32.xlu1 %v59_v2, %s878_s29  ;;  %332 = vrot.lane.b32.xlu0 %v942_v0, %s878_s29 }
  0x68   :  { %290 = vrot.lane.b32.xlu1 %v58_v3, %s879_s30  ;;  %288 = vrot.lane.b32.xlu0 %v944_v1, %s879_s30 }
  0x6c   :  { %294 = vrot.lane.b32.xlu1 %v59_v2, %s879_s30  ;;  %292 = vrot.lane.b32.xlu0 %v942_v0, %s879_s30 }
  0x70   :  { %370 = vrot.lane.b32.xlu1 %v58_v3, %s881_s4  ;;  %368 = vrot.lane.b32.xlu0 %v944_v1, %s881_s4 }
  0x74   :  { %374 = vrot.lane.b32.xlu1 %v59_v2, %s881_s4  ;;  %372 = vrot.lane.b32.xlu0 %v942_v0, %s881_s4 }
  0xaa   :  { %v108_v5 = vpop.permute.xlu1 %107  ;;  %v104_v6 = vpop.permute.xlu0 %103 }
  0xae   :  { %v110_v8 = vpop.permute.xlu1 %109  ;;  %v184_v9 = vpop.permute.xlu0 %183 }
  0xaf   :  { %v112_v35 = vsel %vm111_vm0, %v108_v5, %v110_v8  ;;  %v115_v36 = vsel %vm111_vm0, %v110_v8, %v104_v6 }
  0xb0   :  { %v139_v47 = vmul.f32 %v122_v23, %v115_v36  ;;  %v142_v48 = vmul.f32 %v134_v24, %v112_v35 }
  0xb2   :  { %v186_v11 = vpop.permute.xlu1 %185  ;;  %v106_v12 = vpop.permute.xlu0 %105  ;;  %v412_v3 = vrot.slane %v139_v47, 4 }
  0xb3   :  { %v194_v38 = vsel %vm191_vm1, %v184_v9, %v186_v11  ;;  %v114_v39 = vsel %vm111_vm0, %v104_v6, %v106_v12  ;;  %v113_v42 = vsel %vm111_vm0, %v106_v12, %v108_v5  ;;  %v415_v5 = vrot.slane %v142_v48, 4 }
  0xb4   :  { %v220_v51 = vmul.f32 %v206_v25, %v194_v38  ;;  %v140_v52 = vmul.f32 %v126_v26, %v114_v39  ;;  %v141_v55 = vmul.f32 %v130_v27, %v113_v42 }
  0xb6   :  { %v190_v19 = vpop.permute.xlu1 %189  ;;  %v188_v20 = vpop.permute.xlu0 %187  ;;  %v425_v8 = vrot.slane %v220_v51, 4  ;;  %v414_v12 = vrot.slane %v141_v55, 4 }
  0xb7   :  { %v195_v43 = vsel %vm191_vm1, %v190_v19, %v184_v9  ;;  %v193_v49 = vsel %vm191_vm1, %v186_v11, %v188_v20  ;;  %v192_v57 = vsel %vm191_vm1, %v188_v20, %v190_v19  ;;  %v413_v9 = vrot.slane %v140_v52, 4 }
  0xb8   :  { %v219_v56 = vmul.f32 %v202_v28, %v195_v43  ;;  %v221_v59 = vmul.f32 %v210_v31, %v193_v49  ;;  %v222_v10 = vmul.f32 %v214_v32, %v192_v57  ;;  %v342_v57 = vld [vmem:[#allocation5 + $0x7] ss:$8 sm:$0xf] }
  0xba   :  { %v65_v29 = vpop.permute.xlu1 %64  ;;  %v63_v30 = vpop.permute.xlu0 %62  ;;  %v424_v16 = vrot.slane %v219_v56, 4  ;;  %v426_v21 = vrot.slane %v221_v59, 4  ;;  %v427_v31 = vrot.slane %v222_v10, 4 }
  0xbb   :  { %v75_v50 = vsel %vm72_vm2, %v63_v30, %v65_v29 }
  0xbc   :  { %v100_v60 = vmul.f32 %v86_v33, %v75_v50 }
  0xbe   :  { %v69_v44 = vpop.permute.xlu1 %68  ;;  %v67_v45 = vpop.permute.xlu0 %66  ;;  %v464_v25 = vsel %vm462_vm3, %v100_v60, %v413_v9  ;;  %v351_v9 = vrot.slane %v342_v57, %v974_v17 }
  0xbf   :  { %v76_v61 = vsel %vm72_vm2, %v69_v44, %v63_v30  ;;  %v73_v62 = vsel %vm72_vm2, %v67_v45, %v69_v44  ;;  %v74_v6 = vsel %vm72_vm2, %v65_v29, %v67_v45 }
  0xc0   :  { %v99_v19 = vmul.f32 %v82_v37, %v76_v61  ;;  %v102_v20 = vmul.f32 %v94_v41, %v73_v62  ;;  %v101_v22 = vmul.f32 %v90_v40, %v74_v6  ;;  %v224_v37 = vld [vmem:[#allocation5 + $0x4] ss:$8 sm:$0xf] }
  0xc1   :  { %v229_v47 = vrot.slane %v224_v37, %v970_v14  ;;  %v233_v48 = vrot.slane %v224_v37, %v974_v17  ;;  %v237_v49 = vrot.slane %v224_v37, %v976_v18  ;;  %v241_v50 = vrot.slane %v224_v37, %v972_v15 }
  0xc2   :  { %v146_v63 = vpop.permute.xlu1 %145  ;;  %v144_v2 = vpop.permute.xlu0 %143  ;;  %v463_v35 = vsel %vm462_vm3, %v99_v19, %v412_v3  ;;  %v466_v36 = vsel %vm462_vm3, %v102_v20, %v415_v5  ;;  %v465_v42 = vsel %vm462_vm3, %v101_v22, %v414_v12  ;;  %v355_v19 = vrot.slane %v342_v57, %v976_v18 }
  0xc3   :  { %v154_v7 = vsel %vm151_vm4, %v144_v2, %v146_v63  ;;  %v243_v55 = vcombine.low %v237_v49, %v241_v50 }
  0xc4   :  { %v180_v11 = vmul.f32 %v166_v46, %v154_v7  ;;  %v359_v7 = vrot.slane %v342_v57, %v972_v15 }
  0xc5   :  { %v247_v3 = vmul.f32 %v243_v55, %v942_v0 }
  0xc6   :  { %v150_v23 = vpop.permute.xlu1 %149  ;;  %v148_v24 = vpop.permute.xlu0 %147  ;;  %v468_v26 = vsel %vm462_vm3, %v180_v11, %v425_v8  ;;  %v302_v11 = vld [vmem:[#allocation5 + $0x6] ss:$8 sm:$0xf] }
  0xc7   :  { %v155_v27 = vsel %vm151_vm4, %v150_v23, %v144_v2  ;;  %v152_v28 = vsel %vm151_vm4, %v148_v24, %v150_v23  ;;  %v153_v29 = vsel %vm151_vm4, %v146_v63, %v148_v24  ;;  %v737_v30 = vpack.c.bf16 %v468_v26, %v464_v25 }
  0xc8   :  { %v179_v32 = vmul.f32 %v162_v53, %v155_v27  ;;  %v181_v33 = vmul.f32 %v170_v54, %v153_v29  ;;  %v182_v34 = vmul.f32 %v174_v58, %v152_v28  ;;  %v262_v53 = vld [vmem:[#allocation5 + $0x5] ss:$8 sm:$0xf]  ;;  %v242_v54 = vcombine.low %v229_v47, %v233_v48 }
  0xc9   :  { %738 = vmatprep.subr.bf16.mxu0 %v737_v30  ;;  %v267_v59 = vrot.slane %v262_v53, %v970_v14  ;;  %v279_v60 = vrot.slane %v262_v53, %v972_v15  ;;  %v271_v61 = vrot.slane %v262_v53, %v974_v17  ;;  %v275_v62 = vrot.slane %v262_v53, %v976_v18 }
  0xca   :  { %v251_v38 = vpop.permute.xlu1 %250  ;;  %v249_v39 = vpop.permute.xlu0 %248  ;;  %v467_v40 = vsel %vm462_vm3, %v179_v32, %v424_v16  ;;  %v470_v41 = vsel %vm462_vm3, %v182_v34, %v427_v31  ;;  %v469_v43 = vsel %vm462_vm3, %v181_v33, %v426_v21  ;;  %v347_v63 = vrot.slane %v342_v57, %v970_v14  ;;  %v382_v32 = vld [vmem:[#allocation5 + $0x20] ss:$8 sm:$0xf] }
  0xcb   :  { %v739_v44 = vpack.c.bf16 %v467_v40, %v463_v35  ;;  %v745_v45 = vpack.c.bf16 %v470_v41, %v466_v36  ;;  %v747_v46 = vpack.c.bf16 %v469_v43, %v465_v42  ;;  %v1050_v2 = vmul.f32 %v242_v54, %v944_v1 }
  0xcc   :  { %v259_v12 = vsel %vm256_vm5, %v249_v39, %v251_v38  ;;  %v307_v25 = vrot.slane %v302_v11, %v970_v14  ;;  %v319_v35 = vrot.slane %v302_v11, %v972_v15  ;;  %v435_v36 = vcombine.high %v247_v3, %v247_v3 }
  0xcd   :  { %740 = vmatpush1.bf16.msra.mxu0 %v739_v44  ;;  %746 = vmatprep.subr.bf16.mxu1 %v745_v45  ;;  %v434_v21 = vcombine.high %v1050_v2, %v1050_v2  ;;  %v284_v26 = vmul.f32 %v267_v59, %v259_v12  ;;  %v387_v43 = vrot.slane %v382_v32, %v970_v14 }
  0xce   :  { %v255_v51 = vpop.permute.xlu1 %254  ;;  %748 = vmatpush1.bf16.msra.mxu1 %v747_v46  ;;  %v253_v52 = vpop.permute.xlu0 %252  ;;  %v399_v59 = vrot.slane %v382_v32, %v972_v15 }
  0xcf   :  { %v260_v5 = vsel %vm256_vm5, %v255_v51, %v249_v39  ;;  %v258_v6 = vsel %vm256_vm5, %v251_v38, %v253_v52  ;;  %v257_v1 = vsel %vm256_vm5, %v253_v52, %v255_v51  ;;  %v311_v38 = vrot.slane %v302_v11, %v974_v17 }
  0xd0   :  { %v287_v22 = vmul.f32 %v279_v60, %v260_v5  ;;  %v285_v23 = vmul.f32 %v271_v61, %v258_v6  ;;  %v286_v27 = vmul.f32 %v275_v62, %v257_v1  ;;  %v315_v39 = vrot.slane %v302_v11, %v976_v18 }
  0xd1   :  { %v442_v44 = vrot.slane %v284_v26, 4  ;;  %v391_v1 = vrot.slane %v382_v32, %v974_v17  ;;  %v483_v26 = vld [vmem:[#allocation7] sm:$0xff] }
  0xd2   :  { %v331_v56 = vpop.permute.xlu1 %330  ;;  %v329_v58 = vpop.permute.xlu0 %328  ;;  %v445_v40 = vrot.slane %v287_v22, 4  ;;  %v443_v41 = vrot.slane %v285_v23, 4  ;;  %v444_v45 = vrot.slane %v286_v27, 4 }
  0xd3   :  { %v339_v0 = vsel %vm336_vm6, %v329_v58, %v331_v56 }
  0xd4   :  { %v364_v28 = vmul.f32 %v347_v63, %v339_v0  ;;  %v472_v57 = vsel %vm462_vm3, %v434_v21, %v443_v41  ;;  %v473_v6 = vsel %vm462_vm3, %v247_v3, %v444_v45  ;;  %v395_v0 = vrot.slane %v382_v32, %v976_v18 }
  0xd6   :  { %v335_v8 = vpop.permute.xlu1 %334  ;;  %v333_v10 = vpop.permute.xlu0 %332  ;;  %v454_v46 = vrot.slane %v364_v28, 4  ;;  %v485_v28 = vld [vmem:[#allocation7 + $0x10] sm:$0xff] }
  0xd7   :  { %v340_v16 = vsel %vm336_vm6, %v335_v8, %v329_v58  ;;  %v338_v20 = vsel %vm336_vm6, %v331_v56, %v333_v10  ;;  %v337_v24 = vsel %vm336_vm6, %v333_v10, %v335_v8  ;;  %v474_v58 = vsel %vm462_vm3, %v435_v36, %v445_v40 }
  0xd8   :  { %v367_v29 = vmul.f32 %v359_v7, %v340_v16  ;;  %v365_v33 = vmul.f32 %v351_v9, %v338_v20  ;;  %v366_v37 = vmul.f32 %v355_v19, %v337_v24  ;;  %v471_v10 = vsel %vm462_vm3, %v1050_v2, %v442_v44 }
  0xda   :  { %v291_v30 = vpop.permute.xlu1 %290  ;;  %v289_v31 = vpop.permute.xlu0 %288  ;;  %v457_v47 = vrot.slane %v367_v29, 4  ;;  %v455_v50 = vrot.slane %v365_v33, 4  ;;  %v456_v54 = vrot.slane %v366_v37, 4  ;;  %v486_v29 = vld [vmem:[#allocation7 + $0x18] sm:$0xff] }
  0xdb   :  { %v299_v34 = vsel %vm296_vm7, %v289_v31, %v291_v30 }
  0xdc   :  { %v324_v42 = vmul.f32 %v307_v25, %v299_v34 }
  0xde   :  { %v295_v48 = vpop.permute.xlu1 %294  ;;  %v293_v49 = vpop.permute.xlu0 %292  ;;  %v475_v60 = vsel %vm462_vm3, %v324_v42, %v454_v46 }
  0xdf   :  { %v300_v51 = vsel %vm296_vm7, %v295_v48, %v289_v31  ;;  %v297_v52 = vsel %vm296_vm7, %v293_v49, %v295_v48  ;;  %v298_v53 = vsel %vm296_vm7, %v291_v30, %v293_v49  ;;  %v743_v12 = vpack.c.bf16 %v475_v60, %v471_v10 }
  0xe0   :  { %v327_v55 = vmul.f32 %v319_v35, %v300_v51  ;;  %v325_v56 = vmul.f32 %v311_v38, %v298_v53  ;;  %v326_v14 = vmul.f32 %v315_v39, %v297_v52 }
  0xe2   :  { %v371_v61 = vpop.permute.xlu1 %370  ;;  %v369_v62 = vpop.permute.xlu0 %368  ;;  %v476_v63 = vsel %vm462_vm3, %v325_v56, %v455_v50  ;;  %v478_v5 = vsel %vm462_vm3, %v327_v55, %v457_v47  ;;  %v477_v7 = vsel %vm462_vm3, %v326_v14, %v456_v54 }
  0xe3   :  { %v741_v8 = vpack.c.bf16 %v476_v63, %v472_v57  ;;  %v749_v9 = vpack.c.bf16 %v478_v5, %v474_v58  ;;  %v751_v11 = vpack.c.bf16 %v477_v7, %v473_v6  ;;  %v379_v15 = vsel %vm376_vm8, %v369_v62, %v371_v61 }
  0xe4   :  { %v404_v19 = vmul.f32 %v387_v43, %v379_v15 }
  0xe5   :  { %742 = vmatprep.subr.bf16.mxu0 %v741_v8  ;;  %750 = vmatprep.subr.bf16.mxu1 %v749_v9 }
  0xe6   :  { %v375_v16 = vpop.permute.xlu1 %374  ;;  %744 = vmatpush1.bf16.msra.mxu0 %v743_v12  ;;  %752 = vmatpush1.bf16.msra.mxu1 %v751_v11  ;;  %v373_v3 = vpop.permute.xlu0 %372  ;;  %v479_v27 = vsel %vm462_vm3, %v404_v19, 1.0 }
  0xe7   :  { %v380_v20 = vsel %vm376_vm8, %v375_v16, %v369_v62  ;;  %v377_v2 = vsel %vm376_vm8, %v373_v3, %v375_v16  ;;  %v378_v21 = vsel %vm376_vm8, %v371_v61, %v373_v3 }
  0xe8   :  { %v407_v22 = vmul.f32 %v399_v59, %v380_v20  ;;  %v405_v17 = vmul.f32 %v391_v1, %v378_v21  ;;  %v406_v23 = vmul.f32 %v395_v0, %v377_v2 }
  0xea   :  { %v480_v18 = vsel %vm462_vm3, %v405_v17, 1.0  ;;  %v482_v24 = vsel %vm462_vm3, %v407_v22, 1.0  ;;  %v481_v25 = vsel %vm462_vm3, %v406_v23, 1.0 }
  0xeb   :  { %725 = vmatprep.subr.msk.mxu0 %vm500_vm9, %v480_v18  ;;  %731 = vmatprep.subr.msk.mxu1 %vm500_vm9, %v482_v24 }
  0xec   :  { %726 = vmatpush1.msk.msra.mxu0 %vm500_vm9, %v479_v27  ;;  %732 = vmatpush1.msk.msra.mxu1 %vm500_vm9, %v481_v25 }
  0xed   :  { %727 = vmatmul.mubr.msk.f32.vlgmr.msra.gmra.mrb[0].mxu0 %vm487_vm10, %v483_v26  ;;  %733 = vmatmul.mubr.msk.f32.vlgmr.msra.gmra.mrb[0].mxu1 %vm487_vm10, %v483_v26 }
  0xee   :  { %583 = vmatprep.mubr.f32.mxu0 %v880_v4  ;;  %672 = vmatprep.mubr.f32.mxu1 %v880_v4 }
  0xf1   :  { %728 = vmatmul.mubr.msk.f32.gmra.mrb[2].mxu0 %vm487_vm10, %v484_v13  ;;  %734 = vmatmul.mubr.msk.f32.gmra.mrb[2].mxu1 %vm487_vm10, %v484_v13 }
  0xf2   :  { %589 = vmatprep.mubr.f32.mxu0 %v880_v4  ;;  %678 = vmatprep.mubr.f32.mxu1 %v880_v4 }
  0xf5   :  { %729 = vmatmul.mubr.msk.f32.gmra.mrb[4].mxu0 %vm487_vm10, %v485_v28  ;;  %735 = vmatmul.mubr.msk.f32.gmra.mrb[4].mxu1 %vm487_vm10, %v485_v28 }
  0xf6   :  { %595 = vmatprep.mubr.f32.mxu0 %v880_v4  ;;  %684 = vmatprep.mubr.f32.mxu1 %v880_v4 }
  0xf9   :  { %730 = vmatmul.mubr.msk.f32.gmra.mrb[6].mxu0 %vm487_vm10, %v486_v29  ;;  %736 = vmatmul.mubr.msk.f32.gmra.mrb[6].mxu1 %vm487_vm10, %v486_v29 }
 0x1c0   :  { %v579_v30 = vpop.f32.mrb[0].mxu0  ;;  %v668_v31 = vpop.f32.mrb[0].mxu1 }
 0x1c1   :  { %691 = vst [vmem:[#allocation8] sm:$0xff] %v579_v30  ;;  %693 = vst [vmem:[#allocation8 + $0x10] sm:$0xff] %v668_v31  ;;  %v581_v32 = vpop.f32.mrb[1].mxu0  ;;  %v670_v33 = vpop.f32.mrb[1].mxu1 }
 0x1c2   :  { %692 = vst [vmem:[#allocation8 + $0x8] sm:$0xff] %v581_v32  ;;  %694 = vst [vmem:[#allocation8 + $0x18] sm:$0xff] %v670_v33 }
 0x1c4   :  { %v585_v34 = vpop.f32.mrb[2].mxu0  ;;  %v674_v35 = vpop.f32.mrb[2].mxu1 }
 0x1c5   :  { %695 = vst [vmem:[#allocation8 + $0x20] sm:$0xff] %v585_v34  ;;  %697 = vst [vmem:[#allocation8 + $0x30] sm:$0xff] %v674_v35  ;;  %v587_v36 = vpop.f32.mrb[3].mxu0  ;;  %v676_v37 = vpop.f32.mrb[3].mxu1 }
 0x1c6   :  { %696 = vst [vmem:[#allocation8 + $0x28] sm:$0xff] %v587_v36  ;;  %698 = vst [vmem:[#allocation8 + $0x38] sm:$0xff] %v676_v37 }
 0x1c8   :  { %v591_v4 = vpop.f32.mrb[4].mxu0  ;;  %v680_v38 = vpop.f32.mrb[4].mxu1 }
 0x1c9   :  { %699 = vst [vmem:[#allocation8 + $0x40] sm:$0xff] %v591_v4  ;;  %701 = vst [vmem:[#allocation8 + $0x50] sm:$0xff] %v680_v38  ;;  %v593_v39 = vpop.f32.mrb[5].mxu0  ;;  %v682_v40 = vpop.f32.mrb[5].mxu1 }
 0x1ca   :  { %700 = vst [vmem:[#allocation8 + $0x48] sm:$0xff] %v593_v39  ;;  %702 = vst [vmem:[#allocation8 + $0x58] sm:$0xff] %v682_v40 }
 0x1cc   :  { %v597_v41 = vpop.f32.mrb[6].mxu0  ;;  %v686_v42 = vpop.f32.mrb[6].mxu1 }
 0x1cd   :  { %703 = vst [vmem:[#allocation8 + $0x60] sm:$0xff] %v597_v41  ;;  %705 = vst [vmem:[#allocation8 + $0x70] sm:$0xff] %v686_v42  ;;  %v599_v43 = vpop.f32.mrb[7].mxu0  ;;  %v688_v44 = vpop.f32.mrb[7].mxu1 }
 0x1ce   :  { %704 = vst [vmem:[#allocation8 + $0x68] sm:$0xff] %v599_v43  ;;  %706 = vst [vmem:[#allocation8 + $0x78] sm:$0xff] %v688_v44 }
 0x1cf   :  { %849 = shalt.err (!%p846_p0)
}
 0x1d0   :  { %s850_s1 = scalar_lea.hbm %s1145_s3, 2048 }
 0x1d1   :  { %p851_p1 = scmp.ne.s32.totalorder %s1145_s3, %s850_s1  ;;  %p854_p2 = scmp.lt.u32.totalorder %s850_s1, %s1145_s3 }
 0x1d3   :  { %p856_p3 = pnand %p854_p2, %p851_p1 }
 0x1d5   :  { %859 = shalt.err (!%p856_p3)
}
 0x1d6   :  { %718 = dma.vmem_to_hbm [thread:$0]  %s713_s6, 2048, %s1145_s3, [#allocation4], %s867_s22, %s867_s22, %s868_s23  }
 0x1d7   :  { %864 = dma.done.wait [#allocation4], 2048  }
 0x1d8   :  { %865 = vsyncadd [#allocation4], 4294965248 }
 0x1d9   :  { %722 = vsyncpa [#allocation3], 1 }
 0x1da   :  { %723 = vsyncpa [#allocation6], 1 }
 0x1db   :  { %724 = vsyncpa [#allocation4], 1 }

</bundles_post_ra>
